<compile_context>
chip_gen: v7x
topology: tpu7x:2x2x1
jax: 0.10.0
libtpu: 0.0.40
codegen_flags: <defaults>
</compile_context>

<pallas_src>
import jax
import jax.numpy as jnp
import numpy as np
from jax.experimental import pallas as pl
from jax.experimental.pallas import tpu as pltpu

HIDDEN1 = 15
HIDDEN2 = 10
OUT = 1

# Batch rows per grid step. Double-buffered x block = 2 * TB * K * 4 B
# (= 256 KiB at K=32), far under the scoped-VMEM limit even on v7x.
BLOCK_BATCH = 1024


def fused_mlp_kernel(x_ref, w_ref, b_ref, o_ref):
    """o[0, j] = sum_k w[0, k] * x[j, k] + b   (single fused affine map).

    x_ref: [TB, K]  batch tile (rows on sublanes, features on lanes) - streamed
    w_ref: [1, K]   fused weight row, VMEM-resident across all grid steps
    b_ref: [1, 1]   fused bias scalar (SMEM-resident)
    o_ref: [1, TB]  lane-dense output row (batch along lanes -> unmasked stores)
    """
    y = jnp.dot(w_ref[...], x_ref[...].T, preferred_element_type=jnp.float32)
    o_ref[...] = (y + b_ref[0, 0]).astype(o_ref.dtype)


def _round_up(n, m):
    return ((n + m - 1) // m) * m


def fuse_params(params):
    """Fold the 3 affine layers into (w_row [1, K], b [1, 1]) once, at init.

    Done on host in float64 so the fused constants add no extra rounding on
    top of the unavoidable reassociation vs layer-by-layer fp32 evaluation.
    """
    (w1, b1), (w2, b2), (w3, b3) = params["l1"], params["l2"], params["l3"]
    w1 = np.asarray(w1, np.float64); b1 = np.asarray(b1, np.float64)
    w2 = np.asarray(w2, np.float64); b2 = np.asarray(b2, np.float64)
    w3 = np.asarray(w3, np.float64); b3 = np.asarray(b3, np.float64)
    w_row = w3 @ w2 @ w1                     # [OUT, K] == [1, K]
    b = w3 @ (w2 @ b1 + b2) + b3             # [OUT]    == [1]
    return (jnp.asarray(w_row, jnp.float32),
            jnp.asarray(b.reshape(1, 1), jnp.float32))


def linear2hidden_forward(x, w_row, b, *, block_batch=BLOCK_BATCH,
                          compute_dtype=None):
    """x: [batch, K] float32 -> [batch, 1] float32.

    compute_dtype=jnp.bfloat16 halves HBM traffic of the dominant x stream
    (v6e/v7x); the matmul still accumulates in fp32 and the bias add is fp32.
    """
    batch, k = x.shape
    if compute_dtype is not None:
        x = x.astype(compute_dtype)
        w_row = w_row.astype(compute_dtype)

    # Tile the batch; pad to a block multiple (padded rows are sliced off).
    # Small batches round to a 128-multiple so the output block is lane-dense.
    if batch > block_batch:
        tb = block_batch
        padded = _round_up(batch, tb)
    else:
        padded = _round_up(max(batch, 8), 128)
        tb = padded
    if padded != batch:
        x = jnp.pad(x, ((0, padded - batch), (0, 0)))
    n_blocks = padded // tb

    itemsize = jnp.dtype(x.dtype).itemsize
    cost = pl.CostEstimate(
        flops=2 * padded * k,
        transcendentals=0,
        bytes_accessed=padded * k * itemsize + padded * 4 + (k + 1) * itemsize)

    out_row = pl.pallas_call(
        fused_mlp_kernel,
        out_shape=jax.ShapeDtypeStruct((1, padded), jnp.float32),
        grid=(n_blocks,),
        in_specs=[
            pl.BlockSpec((tb, k), lambda i: (i, 0)),            # x: streamed per block
            pl.BlockSpec((1, k), lambda i: (0, 0)),             # fused W: resident
            pl.BlockSpec((1, 1), lambda i: (0, 0),
                         memory_space=pltpu.MemorySpace.SMEM),  # fused bias scalar
        ],
        out_specs=pl.BlockSpec((1, tb), lambda i: (0, i)),      # lane-dense rows
        compiler_params=pltpu.CompilerParams(
            dimension_semantics=("parallel",),   # shard batch grid over v7x's 2 TCs
            vmem_limit_bytes=32 * 1024 * 1024,   # explicit; fits v7x's smaller VMEM
        ),
        cost_estimate=cost,
    )(x, w_row, b)

    # (1, padded) row -> (batch, 1) column expected by the original module.
    return out_row.reshape(padded, OUT)[:batch]


def init_linear(key, fan_in, fan_out):
    # PyTorch nn.Linear default init: U(-1/sqrt(fan_in), 1/sqrt(fan_in))
    kw, kb = jax.random.split(key)
    bound = 1.0 / float(np.sqrt(fan_in))
    w = jax.random.uniform(kw, (fan_out, fan_in), jnp.float32, -bound, bound)
    b = jax.random.uniform(kb, (fan_out,), jnp.float32, -bound, bound)
    return w, b


def reference_forward(x, params):
    (w1, b1), (w2, b2), (w3, b3) = params["l1"], params["l2"], params["l3"]
    h1 = x @ w1.T + b1
    h2 = h1 @ w2.T + b2
    return h2 @ w3.T + b3


if __name__ == "__main__":
    input_size = 32
    key = jax.random.PRNGKey(0)
    kx, k1, k2, k3 = jax.random.split(key, 4)

    params = {
        "l1": init_linear(k1, input_size, HIDDEN1),
        "l2": init_linear(k2, HIDDEN1, HIDDEN2),
        "l3": init_linear(k3, HIDDEN2, OUT),
    }
    # Fusion / transposes happen once, at parameter-preparation time.
    w_row, b_fused = fuse_params(params)

    # fp32 path: multi-block grid (2048 = 2 x 1024) and padded small-batch path.
    for batch in (2048, 100):
        x = jax.random.normal(jax.random.fold_in(kx, batch),
                              (batch, input_size), jnp.float32)
        y = jax.block_until_ready(linear2hidden_forward(x, w_row, b_fused))
        y_ref = reference_forward(x, params)
        assert y.shape == (batch, OUT)
        assert jnp.allclose(y, y_ref, atol=1e-4, rtol=1e-4), float(
            jnp.max(jnp.abs(y - y_ref)))

    # bf16 input path (halves HBM bytes of the dominant x stream on v6e/v7x);
    # accumulation and bias add stay fp32, so only input rounding differs.
    x = jax.random.normal(kx, (2048, input_size), jnp.float32)
    y_bf16 = jax.block_until_ready(
        linear2hidden_forward(x, w_row, b_fused, compute_dtype=jnp.bfloat16))
    y_ref = reference_forward(x, params)
    assert y_bf16.shape == (2048, OUT)
    assert jnp.allclose(y_bf16, y_ref, atol=5e-2, rtol=5e-2)

    print("KERNEL_OK")
</pallas_src>

<mosaic_0001>
module attributes {stable_mosaic.version = 11 : i64} {
  func.func @fused_mlp_kernel(%arg0: i32, %arg1: memref<1024x32xf32, #tpu.memory_space<vmem>>, %arg2: memref<1x32xf32, #tpu.memory_space<vmem>>, %arg3: memref<1x1xf32, #tpu.memory_space<smem>>, %arg4: memref<1x1024xf32, #tpu.memory_space<vmem>>) attributes {dimension_semantics = [#tpu.dimension_semantics<parallel>], iteration_bounds = array<i64: 2>, scalar_prefetch = 0 : i64, scratch_operands = 0 : i64, tpu.core_type = #tpu.core_type<tc>, window_params = [{transform_indices = @transform_0, window_bounds = array<i64: 1024, 32>}, {pipeline_mode = #tpu.pipeline_mode<synchronous>, transform_indices = @transform_1, window_bounds = array<i64: 1, 32>}, {transform_indices = @transform_2, window_bounds = array<i64: 1, 1>}, {transform_indices = @transform_3, window_bounds = array<i64: 1, 1024>}]} {
    %c0 = arith.constant 0 : index
    %c0_0 = arith.constant 0 : index
    %0 = vector.load %arg2[%c0, %c0_0] : memref<1x32xf32, #tpu.memory_space<vmem>>, vector<1x32xf32>
    %c0_1 = arith.constant 0 : index
    %c0_2 = arith.constant 0 : index
    %1 = vector.load %arg1[%c0_1, %c0_2] : memref<1024x32xf32, #tpu.memory_space<vmem>>, vector<1024x32xf32>
    %2 = tpu.transpose %1, [1, 0] : vector<1024x32xf32> -> vector<32x1024xf32>
    %cst = arith.constant dense<0.000000e+00> : vector<1x1024xf32>
    %3 = tpu.matmul %0, %2, %cst {dimension_numbers = #tpu.dot_dimension_numbers<[1], [0], [0], [1], [0, 0, 1, 1], [], []>} : vector<1x32xf32>, vector<32x1024xf32>, vector<1x1024xf32> -> vector<1x1024xf32>
    %c0_3 = arith.constant 0 : index
    %c0_4 = arith.constant 0 : index
    %4 = memref.load %arg3[%c0_3, %c0_4] : memref<1x1xf32, #tpu.memory_space<smem>>
    %5 = vector.broadcast %4 : f32 to vector<1x1024xf32>
    %6 = arith.addf %3, %5 : vector<1x1024xf32>
    %c0_5 = arith.constant 0 : index
    %c0_6 = arith.constant 0 : index
    %7 = vector.load %arg4[%c0_5, %c0_6] : memref<1x1024xf32, #tpu.memory_space<vmem>>, vector<1x1024xf32>
    tpu.vector_store %arg4[%c0_5, %c0_6], %6 {strides = array<i32>} : memref<1x1024xf32, #tpu.memory_space<vmem>>, vector<1x1024xf32>,
    return
  }
  func.func @transform_0(%arg0: i32) -> (i32, i32) {
    %c0_i32 = arith.constant 0 : i32
    %c0_i32_0 = arith.constant 0 : i32
    return %arg0, %c0_i32 : i32, i32
  }
  func.func @transform_1(%arg0: i32) -> (i32, i32) {
    %c0_i32 = arith.constant 0 : i32
    %c0_i32_0 = arith.constant 0 : i32
    %c0_i32_1 = arith.constant 0 : i32
    return %c0_i32, %c0_i32_0 : i32, i32
  }
  func.func @transform_2(%arg0: i32) -> (i32, i32) {
    %c0_i32 = arith.constant 0 : i32
    %c0_i32_0 = arith.constant 0 : i32
    %c0_i32_1 = arith.constant 0 : i32
    return %c0_i32, %c0_i32_0 : i32, i32
  }
  func.func @transform_3(%arg0: i32) -> (i32, i32) {
    %c0_i32 = arith.constant 0 : i32
    %c0_i32_0 = arith.constant 0 : i32
    return %c0_i32, %arg0 : i32, i32
  }
}

</mosaic_0001>

<bundles_post_ra>
// kernel: tpu_custom_call.1
= control target key start
LH: loop header
LB: loop body
LE: loop exit
PB: predicated region body
PF: predicated region fallthrough
CT: control target
= control target key end

     0   :  { %s2095_s0 = inlined_call_operand.vmem [shape: f32[2048,32], index: 0, kind: input, shape index: {}]   ;;  %s2096_s1 = inlined_call_operand.vmem [shape: f32[1,32], index: 1, kind: input, shape index: {}]   ;;  %s2097_s2 = inlined_call_operand.<no memory space> [shape: f32[1,1], index: 2, kind: input, shape index: {}]   ;;  %s2098_s3 = inlined_call_operand.hbm [shape: f32[1,2048], index: 3, kind: output, shape index: {}]  }
   0x1   :  { %8 = sst [smem:[#allocation2]] %s2097_s2 }
   0x2   :  { %9 = vsyncpa [#allocation4], 0 }
   0x3   :  { %11 = vsyncpa [#allocation4 + $0x1], 0  ;;  %s1711_s14 = smov 0   ;;  %s1713_s15 = smov 0  }
   0x4   :  { %s1715_s16 = smov 0   ;;  %s1717_s17 = smov 0  }
   0x5 LB: > { %s1108_s2 = sadd.s32 4294967295, %s1684_s17   ;;  %s1109_s18 = sadd.s32 4294967294, %s1684_s17   ;;  %s1684_s17 = sphi %s1717_s17, %s2106_s17   ;;  %s1680_s16 = sphi %s1715_s16, %s2105_s16   ;;  %s1676_s15 = sphi %s1713_s15, %s2104_s15   ;;  %s1672_s14 = sphi %s1711_s14, %s2103_s14  }
   0x6   : > { %s1734_s19 = sadd.s32 1, %s1684_s17   ;;  %s92_s20 = sadd.s32 1, %s1680_s16 }
   0x7   : > { %s89_s21 = ssub.s32 %s1684_s17, %s1734_s19  ;;  %p102_p0 = scmp.ne.s32.totalorder %s1680_s16, %s1676_s15 }
   0x8   : > { %p90_p1 = scmp.eq.s32.totalorder %s89_s21, 0  ;;  %p103_p2 = scmp.eq.s32.totalorder %s1108_s2, 1 }
   0x9   : > { %p108_p3 = scmp.ne.s32.totalorder %s1676_s15, %s1672_s14  ;;  %p109_p4 = scmp.eq.s32.totalorder %s1109_s18, 1 }
   0xa   : > { %s1744_s22 = scalar_select %p90_p1, %s1680_s16, %s92_s20  }
   0xb   : > { %p1746_p5 = por %p103_p2, %p102_p0  ;;  %p1750_p6 = por %p109_p4, %p108_p3 }
   0xc   : > { %p1112_p7 = scmp.ge.s32.totalorder %s1684_s17, 1  ;;  %p142_p8 = scmp.lt.s32.totalorder %s1684_s17, 3 }
   0xe   : > { %p143_p9 = pnand %p1112_p7, %p142_p8 }
   0xf   : > { %s1756_s25 = sshll.u32 (!%p143_p9), %s1108_s2, 7  ;;  %vm304_vm0 = vcmask (!%p143_p9), 261120   ;;  %v1761_v0 = vld [vmem:[%s2096_s1] sm:$0x1] (!%p143_p9)  ;;  %s302_s6 = sld [smem:[#allocation2]] (!%p143_p9) }
  0x10   : > { %146 = sbr.rel (%p143_p9) target bundleno = 399 (0x18f), region = 32  ;;  %p167_p10 = scmp.lt.s32.totalorder (!%p143_p9), %s1756_s25, 255  ;;  %1286 = vmatprep.mubr.msk.f32.mxu0 (!%p143_p9), %vm304_vm0, %v1761_v0  ;;  %1320 = vmatprep.mubr.msk.f32.mxu1 (!%p143_p9), %vm304_vm0, %v1761_v0  ;;  %vm1776_vm1 = vmpackc.low (!%p143_p9), %vm304_vm0, %vm304_vm0 }
  0x11   : > { %s163_s7 = sand.u32 (!%p143_p9), 1, %s1676_s15   ;;  %s2053_s13 = scalar_lea.hbm (!%p143_p9), %s2098_s3, %s1756_s25 }
  0x12   : > { %s1113_s8 = sshll.u32 (!%p143_p9), %s163_s7, 3  ;;  %s1036_s2 = scalar_lea.sflag (!%p143_p9), [#allocation4], %s163_s7 }
  0x13   : > { %s165_s9 = scalar_lea.vmem (!%p143_p9), [#allocation3], %s1113_s8  ;;  %s1687_s20 = smov (!%p143_p9), [#allocation3]  }
  0x14   : > { %s1050_s10 = sshll.u32 (!%p143_p9), %s165_s9, 4  ;;  %s1626_s21 = sshll.u32 (!%p143_p9), %s1687_s20, 4  ;;  %s2055_s10 = int_to_ptr.vmem [resolvable:$true] %s1050_s10  ;;  %s1627_s21 = int_to_ptr.vmem [resolvable:$false] %s1626_s21 }
  0x15   : > { %s1622_s18 = scalar_lea.vmem (!%p143_p9), %s2055_s10, 128  ;;  %s1628_s26 = scalar_lea.vmem (!%p143_p9), %s1627_s21, 256 }
  0x16   : > { %p1623_p11 = scmp.ne.s32.totalorder (!%p143_p9), %s2055_s10, %s1622_s18  ;;  %p1629_p0 = scmp.lt.s32.totalorder (!%p143_p9), %s2055_s10, %s1627_s21 }
  0x17   : > { %s168_s28 = scalar_select %p167_p10, %s1756_s25, 255 }
  0x18   : > { %p1624_p12 = pnand %p1623_p11, %p1746_p5  ;;  %p1630_p1 = scmp.lt.s32.totalorder %s1628_s26, %s1622_s18 }
  0x19   : > { %s1115_s29 = sshll.u32 %s168_s28, 3 }
  0x1a   : > { %s1772_s5 = scalar_lea.vmem %s2095_s0, %s1115_s29  ;;  %p1625_p13 = pneg %p1624_p12 }
  0x1b   : > { %v190_v2 = vld [vmem:[%s1772_s5 + $0x80] sm:$0xff]  ;;  %v191_v3 = vld [vmem:[%s1772_s5 + $0x88] sm:$0xff]  ;;  %v192_v13 = vld [vmem:[%s1772_s5 + $0x90] sm:$0xff]  ;;  %p1631_p2 = por %p1630_p1, %p1629_p0 }
  0x1c   : > { %v222_v4 = vld [vmem:[%s1772_s5 + $0x180] sm:$0xff]  ;;  %v1390_v5 = vpack.c.bf16 %v191_v3, %v190_v2  ;;  %v223_v6 = vld [vmem:[%s1772_s5 + $0x188] sm:$0xff]  ;;  %v193_v15 = vld [vmem:[%s1772_s5 + $0x98] sm:$0xff] }
  0x1d   : > { %v174_v7 = vld [vmem:[%s1772_s5] sm:$0xff]  ;;  %v175_v8 = vld [vmem:[%s1772_s5 + $0x8] sm:$0xff]  ;;  %v1438_v9 = vpack.c.bf16 %v223_v6, %v222_v4  ;;  %v224_v16 = vld [vmem:[%s1772_s5 + $0x190] sm:$0xff]  ;;  %v1396_v18 = vpack.c.bf16 %v193_v15, %v192_v13  ;;  %p1632_p3 = pnand %p1631_p2, %p1625_p13 }
  0x1e   : > { %v1393_v10 = vpack.c.bf16 %v175_v8, %v174_v7  ;;  %v206_v11 = vld [vmem:[%s1772_s5 + $0x100] sm:$0xff]  ;;  %v207_v12 = vld [vmem:[%s1772_s5 + $0x108] sm:$0xff]  ;;  %1392 = vmatprep.subr.msk.bf16.mxu0 %vm1776_vm1, %v1390_v5  ;;  %v225_v17 = vld [vmem:[%s1772_s5 + $0x198] sm:$0xff] }
  0x1f   : > { %v1441_v14 = vpack.c.bf16 %v207_v12, %v206_v11  ;;  %1440 = vmatprep.subr.msk.bf16.mxu1 %vm1776_vm1, %v1438_v9  ;;  %v1444_v19 = vpack.c.bf16 %v225_v17, %v224_v16  ;;  %v176_v20 = vld [vmem:[%s1772_s5 + $0x10] sm:$0xff]  ;;  %v177_v21 = vld [vmem:[%s1772_s5 + $0x18] sm:$0xff]  ;;  %v194_v24 = vld [vmem:[%s1772_s5 + $0xa0] sm:$0xff] }
  0x20   : > { %1395 = vmatpush3.bf16.xpose.msk.msra.mxu0 %vm1776_vm1, %v1393_v10  ;;  %v208_v22 = vld [vmem:[%s1772_s5 + $0x110] sm:$0xff]  ;;  %v209_v23 = vld [vmem:[%s1772_s5 + $0x118] sm:$0xff]  ;;  %v195_v25 = vld [vmem:[%s1772_s5 + $0xa8] sm:$0xff]  ;;  %v1399_v28 = vpack.c.bf16 %v177_v21, %v176_v20 }
  0x21   : > { %1443 = vmatpush3.bf16.xpose.msk.msra.mxu1 %vm1776_vm1, %v1441_v14  ;;  %1398 = vmatprep.subr.msk.bf16.mxu0 %vm1776_vm1, %v1396_v18  ;;  %v226_v26 = vld [vmem:[%s1772_s5 + $0x1a0] sm:$0xff]  ;;  %v227_v27 = vld [vmem:[%s1772_s5 + $0x1a8] sm:$0xff]  ;;  %v1447_v29 = vpack.c.bf16 %v209_v23, %v208_v22  ;;  %v1402_v30 = vpack.c.bf16 %v195_v25, %v194_v24  ;;  %v196_v36 = vld [vmem:[%s1772_s5 + $0xb0] sm:$0xff] }
  0x22   : > { %1446 = vmatprep.subr.msk.bf16.mxu1 %vm1776_vm1, %v1444_v19  ;;  %v1450_v31 = vpack.c.bf16 %v227_v27, %v226_v26  ;;  %v178_v32 = vld [vmem:[%s1772_s5 + $0x20] sm:$0xff]  ;;  %v179_v33 = vld [vmem:[%s1772_s5 + $0x28] sm:$0xff]  ;;  %v197_v37 = vld [vmem:[%s1772_s5 + $0xb8] sm:$0xff] }
  0x23   : > { %v210_v34 = vld [vmem:[%s1772_s5 + $0x120] sm:$0xff]  ;;  %v211_v35 = vld [vmem:[%s1772_s5 + $0x128] sm:$0xff]  ;;  %v228_v38 = vld [vmem:[%s1772_s5 + $0x1b0] sm:$0xff]  ;;  %v1405_v40 = vpack.c.bf16 %v179_v33, %v178_v32  ;;  %v1408_v42 = vpack.c.bf16 %v197_v37, %v196_v36 }
  0x24   : > { %v229_v39 = vld [vmem:[%s1772_s5 + $0x1b8] sm:$0xff]  ;;  %v1453_v41 = vpack.c.bf16 %v211_v35, %v210_v34  ;;  %v180_v44 = vld [vmem:[%s1772_s5 + $0x30] sm:$0xff]  ;;  %v198_v48 = vld [vmem:[%s1772_s5 + $0xc0] sm:$0xff] }
  0x25   : > { %v1456_v43 = vpack.c.bf16 %v229_v39, %v228_v38  ;;  %v181_v45 = vld [vmem:[%s1772_s5 + $0x38] sm:$0xff]  ;;  %v212_v46 = vld [vmem:[%s1772_s5 + $0x130] sm:$0xff]  ;;  %v199_v49 = vld [vmem:[%s1772_s5 + $0xc8] sm:$0xff] }
  0x26   : > { %v213_v47 = vld [vmem:[%s1772_s5 + $0x138] sm:$0xff]  ;;  %v230_v50 = vld [vmem:[%s1772_s5 + $0x1c0] sm:$0xff]  ;;  %v231_v51 = vld [vmem:[%s1772_s5 + $0x1c8] sm:$0xff]  ;;  %v1411_v52 = vpack.c.bf16 %v181_v45, %v180_v44  ;;  %v1414_v54 = vpack.c.bf16 %v199_v49, %v198_v48 }
  0x27   : > { %v1459_v53 = vpack.c.bf16 %v213_v47, %v212_v46  ;;  %v1462_v55 = vpack.c.bf16 %v231_v51, %v230_v50  ;;  %v182_v56 = vld [vmem:[%s1772_s5 + $0x40] sm:$0xff]  ;;  %v183_v57 = vld [vmem:[%s1772_s5 + $0x48] sm:$0xff]  ;;  %v200_v60 = vld [vmem:[%s1772_s5 + $0xd0] sm:$0xff] }
  0x28   : > { %1401 = vmatpush3.bf16.xpose.msk.msra.mxu0 %vm1776_vm1, %v1399_v28  ;;  %v214_v58 = vld [vmem:[%s1772_s5 + $0x140] sm:$0xff]  ;;  %v215_v59 = vld [vmem:[%s1772_s5 + $0x148] sm:$0xff]  ;;  %v201_v61 = vld [vmem:[%s1772_s5 + $0xd8] sm:$0xff]  ;;  %v1417_v2 = vpack.c.bf16 %v183_v57, %v182_v56 }
  0x29   : > { %1449 = vmatpush3.bf16.xpose.msk.msra.mxu1 %vm1776_vm1, %v1447_v29  ;;  %1404 = vmatprep.subr.msk.bf16.mxu0 %vm1776_vm1, %v1402_v30  ;;  %v232_v62 = vld [vmem:[%s1772_s5 + $0x1d0] sm:$0xff]  ;;  %v233_v63 = vld [vmem:[%s1772_s5 + $0x1d8] sm:$0xff]  ;;  %v1465_v3 = vpack.c.bf16 %v215_v59, %v214_v58  ;;  %v1420_v4 = vpack.c.bf16 %v201_v61, %v200_v60  ;;  %v202_v10 = vld [vmem:[%s1772_s5 + $0xe0] sm:$0xff] }
  0x2a   : > { %1452 = vmatprep.subr.msk.bf16.mxu1 %vm1776_vm1, %v1450_v31  ;;  %v1468_v5 = vpack.c.bf16 %v233_v63, %v232_v62  ;;  %v184_v6 = vld [vmem:[%s1772_s5 + $0x50] sm:$0xff]  ;;  %v185_v7 = vld [vmem:[%s1772_s5 + $0x58] sm:$0xff]  ;;  %v203_v11 = vld [vmem:[%s1772_s5 + $0xe8] sm:$0xff] }
  0x2b   : > { %v216_v8 = vld [vmem:[%s1772_s5 + $0x150] sm:$0xff]  ;;  %v217_v9 = vld [vmem:[%s1772_s5 + $0x158] sm:$0xff]  ;;  %v234_v12 = vld [vmem:[%s1772_s5 + $0x1e0] sm:$0xff]  ;;  %v1423_v14 = vpack.c.bf16 %v185_v7, %v184_v6  ;;  %v1426_v16 = vpack.c.bf16 %v203_v11, %v202_v10 }
  0x2c   : > { %v235_v13 = vld [vmem:[%s1772_s5 + $0x1e8] sm:$0xff]  ;;  %v1471_v15 = vpack.c.bf16 %v217_v9, %v216_v8  ;;  %v186_v18 = vld [vmem:[%s1772_s5 + $0x60] sm:$0xff]  ;;  %v204_v22 = vld [vmem:[%s1772_s5 + $0xf0] sm:$0xff] }
  0x2d   : > { %v1474_v17 = vpack.c.bf16 %v235_v13, %v234_v12  ;;  %v187_v19 = vld [vmem:[%s1772_s5 + $0x68] sm:$0xff]  ;;  %v218_v20 = vld [vmem:[%s1772_s5 + $0x160] sm:$0xff]  ;;  %v205_v23 = vld [vmem:[%s1772_s5 + $0xf8] sm:$0xff] }
  0x2e   : > { %v219_v21 = vld [vmem:[%s1772_s5 + $0x168] sm:$0xff]  ;;  %v236_v24 = vld [vmem:[%s1772_s5 + $0x1f0] sm:$0xff]  ;;  %v237_v25 = vld [vmem:[%s1772_s5 + $0x1f8] sm:$0xff]  ;;  %v1429_v26 = vpack.c.bf16 %v187_v19, %v186_v18  ;;  %v1432_v28 = vpack.c.bf16 %v205_v23, %v204_v22 }
  0x2f   : > { %v1477_v27 = vpack.c.bf16 %v219_v21, %v218_v20  ;;  %v1480_v29 = vpack.c.bf16 %v237_v25, %v236_v24  ;;  %v188_v30 = vld [vmem:[%s1772_s5 + $0x70] sm:$0xff]  ;;  %v189_v31 = vld [vmem:[%s1772_s5 + $0x78] sm:$0xff]  ;;  %v254_v34 = vld [vmem:[%s1772_s5 + $0x280] sm:$0xff] }
  0x30   : > { %1407 = vmatpush3.bf16.xpose.msk.msra.mxu0 %vm1776_vm1, %v1405_v40  ;;  %v220_v32 = vld [vmem:[%s1772_s5 + $0x170] sm:$0xff]  ;;  %v221_v33 = vld [vmem:[%s1772_s5 + $0x178] sm:$0xff]  ;;  %v255_v35 = vld [vmem:[%s1772_s5 + $0x288] sm:$0xff]  ;;  %v1435_v38 = vpack.c.bf16 %v189_v31, %v188_v30 }
  0x31   : > { %1455 = vmatpush3.bf16.xpose.msk.msra.mxu1 %vm1776_vm1, %v1453_v41  ;;  %1410 = vmatprep.subr.msk.bf16.mxu0 %vm1776_vm1, %v1408_v42  ;;  %v286_v36 = vld [vmem:[%s1772_s5 + $0x380] sm:$0xff]  ;;  %v287_v37 = vld [vmem:[%s1772_s5 + $0x388] sm:$0xff]  ;;  %v1483_v39 = vpack.c.bf16 %v221_v33, %v220_v32  ;;  %v1486_v40 = vpack.c.bf16 %v255_v35, %v254_v34  ;;  %v256_v46 = vld [vmem:[%s1772_s5 + $0x290] sm:$0xff] }
  0x32   : > { %1458 = vmatprep.subr.msk.bf16.mxu1 %vm1776_vm1, %v1456_v43  ;;  %v1534_v41 = vpack.c.bf16 %v287_v37, %v286_v36  ;;  %v238_v42 = vld [vmem:[%s1772_s5 + $0x200] sm:$0xff]  ;;  %v239_v43 = vld [vmem:[%s1772_s5 + $0x208] sm:$0xff]  ;;  %v257_v47 = vld [vmem:[%s1772_s5 + $0x298] sm:$0xff] }
  0x33   : > { %v270_v44 = vld [vmem:[%s1772_s5 + $0x300] sm:$0xff]  ;;  %v271_v45 = vld [vmem:[%s1772_s5 + $0x308] sm:$0xff]  ;;  %v288_v48 = vld [vmem:[%s1772_s5 + $0x390] sm:$0xff]  ;;  %v1489_v50 = vpack.c.bf16 %v239_v43, %v238_v42 }
  0x34   : > { %v289_v49 = vld [vmem:[%s1772_s5 + $0x398] sm:$0xff]  ;;  %v1537_v51 = vpack.c.bf16 %v271_v45, %v270_v44  ;;  %v272_v56 = vld [vmem:[%s1772_s5 + $0x310] sm:$0xff]  ;;  %v258_v58 = vld [vmem:[%s1772_s5 + $0x2a0] sm:$0xff] }
  0x35   : > { %v273_v57 = vld [vmem:[%s1772_s5 + $0x318] sm:$0xff]  ;;  %v259_v59 = vld [vmem:[%s1772_s5 + $0x2a8] sm:$0xff]  ;;  %v290_v60 = vld [vmem:[%s1772_s5 + $0x3a0] sm:$0xff] }
  0x36   : > { %v291_v61 = vld [vmem:[%s1772_s5 + $0x3a8] sm:$0xff]  ;;  %v1543_v63 = vpack.c.bf16 %v273_v57, %v272_v56  ;;  %v274_v6 = vld [vmem:[%s1772_s5 + $0x320] sm:$0xff]  ;;  %v260_v8 = vld [vmem:[%s1772_s5 + $0x2b0] sm:$0xff] }
  0x37   : > { %v275_v7 = vld [vmem:[%s1772_s5 + $0x328] sm:$0xff]  ;;  %v261_v9 = vld [vmem:[%s1772_s5 + $0x2b8] sm:$0xff]  ;;  %v292_v10 = vld [vmem:[%s1772_s5 + $0x3b0] sm:$0xff] }
  0x38   : > { %1413 = vmatpush3.bf16.xpose.msk.msra.mxu0 %vm1776_vm1, %v1411_v52  ;;  %v1492_v52 = vpack.c.bf16 %v257_v47, %v256_v46  ;;  %v293_v11 = vld [vmem:[%s1772_s5 + $0x3b8] sm:$0xff]  ;;  %v1549_v13 = vpack.c.bf16 %v275_v7, %v274_v6  ;;  %v276_v18 = vld [vmem:[%s1772_s5 + $0x330] sm:$0xff]  ;;  %v262_v20 = vld [vmem:[%s1772_s5 + $0x2c0] sm:$0xff] }
  0x39   : > { %1461 = vmatpush3.bf16.xpose.msk.msra.mxu1 %vm1776_vm1, %v1459_v53  ;;  %1416 = vmatprep.subr.msk.bf16.mxu0 %vm1776_vm1, %v1414_v54  ;;  %v1540_v53 = vpack.c.bf16 %v289_v49, %v288_v48  ;;  %v240_v54 = vld [vmem:[%s1772_s5 + $0x210] sm:$0xff]  ;;  %v277_v19 = vld [vmem:[%s1772_s5 + $0x338] sm:$0xff]  ;;  %v263_v21 = vld [vmem:[%s1772_s5 + $0x2c8] sm:$0xff] }
  0x3a   : > { %1464 = vmatprep.subr.msk.bf16.mxu1 %vm1776_vm1, %v1462_v55  ;;  %v241_v55 = vld [vmem:[%s1772_s5 + $0x218] sm:$0xff]  ;;  %v294_v22 = vld [vmem:[%s1772_s5 + $0x3c0] sm:$0xff]  ;;  %v295_v23 = vld [vmem:[%s1772_s5 + $0x3c8] sm:$0xff]  ;;  %v1555_v25 = vpack.c.bf16 %v277_v19, %v276_v18 }
  0x3b   : > { %v1495_v62 = vpack.c.bf16 %v241_v55, %v240_v54  ;;  %v278_v30 = vld [vmem:[%s1772_s5 + $0x340] sm:$0xff]  ;;  %v279_v31 = vld [vmem:[%s1772_s5 + $0x348] sm:$0xff]  ;;  %v264_v32 = vld [vmem:[%s1772_s5 + $0x2d0] sm:$0xff] }
  0x3c   : > { %v265_v33 = vld [vmem:[%s1772_s5 + $0x2d8] sm:$0xff]  ;;  %v296_v34 = vld [vmem:[%s1772_s5 + $0x3d0] sm:$0xff]  ;;  %v1561_v37 = vpack.c.bf16 %v279_v31, %v278_v30  ;;  %v266_v44 = vld [vmem:[%s1772_s5 + $0x2e0] sm:$0xff] }
  0x3d   : > { %v297_v35 = vld [vmem:[%s1772_s5 + $0x3d8] sm:$0xff]  ;;  %v280_v42 = vld [vmem:[%s1772_s5 + $0x350] sm:$0xff]  ;;  %v267_v45 = vld [vmem:[%s1772_s5 + $0x2e8] sm:$0xff] }
  0x3e   : > { %v281_v43 = vld [vmem:[%s1772_s5 + $0x358] sm:$0xff]  ;;  %v298_v46 = vld [vmem:[%s1772_s5 + $0x3e0] sm:$0xff]  ;;  %v299_v47 = vld [vmem:[%s1772_s5 + $0x3e8] sm:$0xff] }
  0x3f   : > { %v1567_v49 = vpack.c.bf16 %v281_v43, %v280_v42  ;;  %v282_v54 = vld [vmem:[%s1772_s5 + $0x360] sm:$0xff]  ;;  %v283_v55 = vld [vmem:[%s1772_s5 + $0x368] sm:$0xff]  ;;  %v268_v56 = vld [vmem:[%s1772_s5 + $0x2f0] sm:$0xff] }
  0x40   : > { %1419 = vmatpush3.bf16.xpose.msk.msra.mxu0 %vm1776_vm1, %v1417_v2  ;;  %v1498_v2 = vpack.c.bf16 %v259_v59, %v258_v58  ;;  %v269_v57 = vld [vmem:[%s1772_s5 + $0x2f8] sm:$0xff]  ;;  %v300_v58 = vld [vmem:[%s1772_s5 + $0x3f0] sm:$0xff] }
  0x41   : > { %1467 = vmatpush3.bf16.xpose.msk.msra.mxu1 %vm1776_vm1, %v1465_v3  ;;  %1422 = vmatprep.subr.msk.bf16.mxu0 %vm1776_vm1, %v1420_v4  ;;  %v1546_v3 = vpack.c.bf16 %v291_v61, %v290_v60  ;;  %v242_v4 = vld [vmem:[%s1772_s5 + $0x220] sm:$0xff]  ;;  %v301_v59 = vld [vmem:[%s1772_s5 + $0x3f8] sm:$0xff]  ;;  %v1573_v61 = vpack.c.bf16 %v283_v55, %v282_v54 }
  0x42   : > { %1470 = vmatprep.subr.msk.bf16.mxu1 %vm1776_vm1, %v1468_v5  ;;  %v243_v5 = vld [vmem:[%s1772_s5 + $0x228] sm:$0xff] }
  0x43   : > { %v1501_v12 = vpack.c.bf16 %v243_v5, %v242_v4  ;;  %v284_v4 = vld [vmem:[%s1772_s5 + $0x370] sm:$0xff]  ;;  %v285_v5 = vld [vmem:[%s1772_s5 + $0x378] sm:$0xff] }
  0x44   : > { %v1579_v7 = vpack.c.bf16 %v285_v5, %v284_v4 }
  0x48   : > { %1425 = vmatpush3.bf16.xpose.msk.msra.mxu0 %vm1776_vm1, %v1423_v14  ;;  %v1504_v14 = vpack.c.bf16 %v261_v9, %v260_v8  ;;  %v1686_v8 = vmov 1966171168  }
  0x49   : > { %1473 = vmatpush3.bf16.xpose.msk.msra.mxu1 %vm1776_vm1, %v1471_v15  ;;  %1428 = vmatprep.subr.msk.bf16.mxu0 %vm1776_vm1, %v1426_v16  ;;  %v1552_v15 = vpack.c.bf16 %v293_v11, %v292_v10  ;;  %v244_v16 = vld [vmem:[%s1772_s5 + $0x230] sm:$0xff]  ;;  %v989_v9 = vunpack.c.l.s4 %v1686_v8  ;;  %v991_v10 = vlaneseq  ;;  %v303_v11 = vstv %s302_s6 }
  0x4a   : > { %1476 = vmatprep.subr.msk.bf16.mxu1 %vm1776_vm1, %v1474_v17  ;;  %v245_v17 = vld [vmem:[%s1772_s5 + $0x238] sm:$0xff] }
  0x4b   : > { %v1507_v24 = vpack.c.bf16 %v245_v17, %v244_v16 }
  0x50   : > { %1431 = vmatpush3.bf16.xpose.msk.msra.mxu0 %vm1776_vm1, %v1429_v26  ;;  %v1510_v26 = vpack.c.bf16 %v263_v21, %v262_v20 }
  0x51   : > { %1479 = vmatpush3.bf16.xpose.msk.msra.mxu1 %vm1776_vm1, %v1477_v27  ;;  %1434 = vmatprep.subr.msk.bf16.mxu0 %vm1776_vm1, %v1432_v28  ;;  %v1558_v27 = vpack.c.bf16 %v295_v23, %v294_v22  ;;  %v246_v28 = vld [vmem:[%s1772_s5 + $0x240] sm:$0xff] }
  0x52   : > { %1482 = vmatprep.subr.msk.bf16.mxu1 %vm1776_vm1, %v1480_v29  ;;  %v247_v29 = vld [vmem:[%s1772_s5 + $0x248] sm:$0xff] }
  0x53   : > { %v1513_v36 = vpack.c.bf16 %v247_v29, %v246_v28 }
  0x58   : > { %1437 = vmatpush3.bf16.xpose.msk.msra.mxu0 %vm1776_vm1, %v1435_v38  ;;  %v1516_v38 = vpack.c.bf16 %v265_v33, %v264_v32 }
  0x59   : > { %1485 = vmatpush3.bf16.xpose.msk.msra.mxu1 %vm1776_vm1, %v1483_v39  ;;  %1488 = vmatprep.subr.msk.bf16.mxu0 %vm1776_vm1, %v1486_v40  ;;  %v1564_v39 = vpack.c.bf16 %v297_v35, %v296_v34  ;;  %v248_v40 = vld [vmem:[%s1772_s5 + $0x250] sm:$0xff] }
  0x5a   : > { %1536 = vmatprep.subr.msk.bf16.mxu1 %vm1776_vm1, %v1534_v41  ;;  %v249_v41 = vld [vmem:[%s1772_s5 + $0x258] sm:$0xff] }
  0x5b   : > { %v1519_v48 = vpack.c.bf16 %v249_v41, %v248_v40 }
  0x5f   : > { %1287 = vmatmul.mubr.msk.f32.vlgmr.msra.gmra.mrb[0].mxu0 %vm304_vm0, %v1761_v0 }
  0x60   : > { %1321 = vmatmul.mubr.msk.f32.vlgmr.msra.gmra.mrb[0].mxu1 %vm304_vm0, %v1761_v0  ;;  %1491 = vmatpush3.bf16.xpose.msk.msra.mxu0 %vm1776_vm1, %v1489_v50  ;;  %v1522_v50 = vpack.c.bf16 %v267_v45, %v266_v44 }
  0x61   : > { %1539 = vmatpush3.bf16.xpose.msk.msra.mxu1 %vm1776_vm1, %v1537_v51  ;;  %1494 = vmatprep.subr.msk.bf16.mxu0 %vm1776_vm1, %v1492_v52  ;;  %v1570_v51 = vpack.c.bf16 %v299_v47, %v298_v46  ;;  %v250_v52 = vld [vmem:[%s1772_s5 + $0x260] sm:$0xff] }
  0x62   : > { %1542 = vmatprep.subr.msk.bf16.mxu1 %vm1776_vm1, %v1540_v53  ;;  %1354 = vmatprep.mubr.msk.f32.mxu0 %vm304_vm0, %v1761_v0  ;;  %v251_v53 = vld [vmem:[%s1772_s5 + $0x268] sm:$0xff] }
  0x63   : > { %1388 = vmatprep.mubr.msk.f32.mxu1 %vm304_vm0, %v1761_v0  ;;  %v1525_v60 = vpack.c.bf16 %v251_v53, %v250_v52 }
  0x68   : > { %1497 = vmatpush3.bf16.xpose.msk.msra.mxu0 %vm1776_vm1, %v1495_v62  ;;  %v1528_v62 = vpack.c.bf16 %v269_v57, %v268_v56 }
  0x69   : > { %1545 = vmatpush3.bf16.xpose.msk.msra.mxu1 %vm1776_vm1, %v1543_v63  ;;  %1500 = vmatprep.subr.msk.bf16.mxu0 %vm1776_vm1, %v1498_v2  ;;  %v1576_v63 = vpack.c.bf16 %v301_v59, %v300_v58  ;;  %v252_v2 = vld [vmem:[%s1772_s5 + $0x270] sm:$0xff] }
  0x6a   : > { %1548 = vmatprep.subr.msk.bf16.mxu1 %vm1776_vm1, %v1546_v3  ;;  %v253_v3 = vld [vmem:[%s1772_s5 + $0x278] sm:$0xff] }
  0x6b   : > { %v1531_v6 = vpack.c.bf16 %v253_v3, %v252_v2 }
  0x70   : > { %1503 = vmatpush3.bf16.xpose.msk.msra.mxu0 %vm1776_vm1, %v1501_v12  ;;  %v990_v12 = vunpack.c.0.s8 %v989_v9 }
  0x71   : > { %1551 = vmatpush3.bf16.xpose.msk.msra.mxu1 %vm1776_vm1, %v1549_v13  ;;  %1506 = vmatprep.subr.msk.bf16.mxu0 %vm1776_vm1, %v1504_v14  ;;  %v992_v13 = vshrl.u32 %v991_v10, 7 }
  0x72   : > { %1554 = vmatprep.subr.msk.bf16.mxu1 %vm1776_vm1, %v1552_v15 }
  0x73   : > { %v993_v19 = vsub.s32 %v990_v12, %v992_v13 }
  0x78   : > { %1509 = vmatpush3.bf16.xpose.msk.msra.mxu0 %vm1776_vm1, %v1507_v24 }
  0x79   : > { %1557 = vmatpush3.bf16.xpose.msk.msra.mxu1 %vm1776_vm1, %v1555_v25  ;;  %1512 = vmatprep.subr.msk.bf16.mxu0 %vm1776_vm1, %v1510_v26 }
  0x7a   : > { %1560 = vmatprep.subr.msk.bf16.mxu1 %vm1776_vm1, %v1558_v27 }
  0x80   : > { %1515 = vmatpush3.bf16.xpose.msk.msra.mxu0 %vm1776_vm1, %v1513_v36 }
  0x81   : > { %1563 = vmatpush3.bf16.xpose.msk.msra.mxu1 %vm1776_vm1, %v1561_v37  ;;  %1518 = vmatprep.subr.msk.bf16.mxu0 %vm1776_vm1, %v1516_v38 }
  0x82   : > { %1566 = vmatprep.subr.msk.bf16.mxu1 %vm1776_vm1, %v1564_v39 }
  0x88   : > { %1521 = vmatpush3.bf16.xpose.msk.msra.mxu0 %vm1776_vm1, %v1519_v48 }
  0x89   : > { %1569 = vmatpush3.bf16.xpose.msk.msra.mxu1 %vm1776_vm1, %v1567_v49  ;;  %1524 = vmatprep.subr.msk.bf16.mxu0 %vm1776_vm1, %v1522_v50 }
  0x8a   : > { %1572 = vmatprep.subr.msk.bf16.mxu1 %vm1776_vm1, %v1570_v51 }
  0x90   : > { %1527 = vmatpush3.bf16.xpose.msk.msra.mxu0 %vm1776_vm1, %v1525_v60 }
  0x91   : > { %1575 = vmatpush3.bf16.xpose.msk.msra.mxu1 %vm1776_vm1, %v1573_v61  ;;  %1530 = vmatprep.subr.msk.bf16.mxu0 %vm1776_vm1, %v1528_v62 }
  0x92   : > { %1578 = vmatprep.subr.msk.bf16.mxu1 %vm1776_vm1, %v1576_v63 }
  0x98   : > { %1533 = vmatpush3.bf16.xpose.msk.msra.mxu0 %vm1776_vm1, %v1531_v6 }
  0x99   : > { %1581 = vmatpush3.bf16.xpose.msk.msra.mxu1 %vm1776_vm1, %v1579_v7 }
  0x9f   : > { %1355 = vmatmul.mubr.msk.f32.vlgmr.msra.gmra.mrb[2].mxu0 %vm304_vm0, %v1761_v0 }
  0xa0   : > { %1389 = vmatmul.mubr.msk.f32.vlgmr.msra.gmra.mrb[2].mxu1 %vm304_vm0, %v1761_v0 }
 0x132   : > { %v758_v14 = vpop.f32.mrb[0].mxu0 }
 0x133   : > { %v759_v15 = vadd.f32 %v758_v14, %v303_v11  ;;  %v829_v16 = vpop.f32.mrb[0].mxu1  ;;  %v760_v17 = vpop.f32.mrb[1].mxu0 }
 0x134   : > { %v830_v1 = vadd.f32 %v829_v16, %v303_v11  ;;  %v761_v18 = vadd.f32 %v760_v17, %v303_v11  ;;  %v831_v20 = vpop.f32.mrb[1].mxu1 }
 0x135   : > { %v832_v21 = vadd.f32 %v831_v20, %v303_v11 }
 0x136   : > { %v984_v22 = vcombine.low %v759_v15, %v761_v18 }
 0x137   : > { %v985_v23 = vcombine.low %v830_v1, %v832_v21 }
 0x138   : > { %v994_v0 = vrot.slane %v984_v22, %v993_v19 }
 0x139   : > { %v1001_v24 = vrot.slane %v985_v23, %v993_v19 }
 0x13b   : > { %v1016_v25 = vcombine.low %v994_v0, %v1001_v24 }
 0x13d   : > { %v1024_v39 = vrot.slane %v1016_v25, %v993_v19 }
 0x172   : > { %v900_v26 = vpop.f32.mrb[2].mxu0 }
 0x173   : > { %v901_v27 = vadd.f32 %v900_v26, %v303_v11  ;;  %v971_v28 = vpop.f32.mrb[2].mxu1  ;;  %v902_v29 = vpop.f32.mrb[3].mxu0 }
 0x174   : > { %v972_v30 = vadd.f32 %v971_v28, %v303_v11  ;;  %v903_v31 = vadd.f32 %v902_v29, %v303_v11  ;;  %v973_v32 = vpop.f32.mrb[3].mxu1 }
 0x175   : > { %v974_v33 = vadd.f32 %v973_v32, %v303_v11 }
 0x176   : > { %v986_v34 = vcombine.low %v901_v27, %v903_v31 }
 0x177   : > { %v987_v35 = vcombine.low %v972_v30, %v974_v33 }
 0x178   : > { %v1008_v36 = vrot.slane %v986_v34, %v993_v19 }
 0x179   : > { %v1015_v37 = vrot.slane %v987_v35, %v993_v19 }
 0x17b   : > { %v1017_v38 = vcombine.low %v1008_v36, %v1015_v37 }
 0x17d   : > { %v1031_v40 = vrot.slane %v1017_v38, %v993_v19 }
 0x17f   : > { %v1032_v41 = vcombine.low %v1024_v39, %v1031_v40 }
 0x181   : > { %1034 = vst [vmem:[%s165_s9] sm:$0xff] %v1032_v41 }
 0x182   : > { %1635 = shalt.err (!%p1632_p3)
}
 0x183   : > { %s1636_s25 = scalar_lea.hbm %s2053_s13, 128  ;;  %s1640_s29 = scalar_lea.hbm %s2098_s3, 256 }
 0x184   : > { %p1637_p4 = scmp.ne.s32.totalorder %s2053_s13, %s1636_s25  ;;  %p1641_p9 = scmp.lt.u32.totalorder %s2053_s13, %s2098_s3 }
 0x185   : > { %p1642_p10 = scmp.lt.u32.totalorder %s1640_s29, %s1636_s25  ;;  %p1644_p12 = scmp.lt.u32.totalorder %s1636_s25, %s2053_s13 }
 0x186   : > { %p1638_p7 = pnand %p1637_p4, %p1746_p5 }
 0x187   : > { %p1643_p11 = por %p1642_p10, %p1641_p9 }
 0x188   : > { %p1639_p8 = pneg %p1638_p7 }
 0x189   : > { %p1645_p13 = por %p1644_p12, %p1643_p11 }
 0x18b   : > { %p1646_p0 = pnand %p1645_p13, %p1639_p8 }
 0x18d   : > { %1649 = shalt.err (!%p1646_p0)
}
 0x18e   : > { %1582 = dma.vmem_to_hbm [thread:$0]  (%p1746_p5), %s2055_s10, 128, %s2053_s13, %s1036_s2  }
 0x18f PF: > { %p1588_p1 = scmp.ge.s32.totalorder %s1684_s17, 2  ;;  %s1062_s5 = sand.u32 1, %s1672_s14  }
 0x190   : > { %s1063_s6 = scalar_lea.sflag [#allocation4], %s1062_s5 }
 0x191   : > { %p1585_p2 = pnand %p1588_p1, %p1750_p6 }
 0x193   : > { %1667 = dma.done.wait (!%p1585_p2), %s1063_s6, 128  }
 0x194   : > { %1669 = vsyncadd (!%p1585_p2), %s1063_s6, 4294967168  ;;  %p14_p3 = scmp.ge.s32.totalorder %s1734_s19, 4   ;;  %s2103_s14 = smov %s1676_s15 }
 0x195   : > { %s2104_s15 = smov %s1680_s16  ;;  %s2105_s16 = smov %s1744_s22 }
 0x196   : > { %s2106_s17 = smov %s1734_s19  ;;  %16 = sbr.rel (!%p14_p3) target bundleno = 5 (0x5), region = 67 }
 0x19d   :  { %1068 = vsyncpa [#allocation4], 1 }
 0x19e   :  { %1070 = vsyncpa [#allocation4 + $0x1], 1 }

</bundles_post_ra>
